<compile_context>
chip_gen: v7x
topology: tpu7x:2x2x1
jax: 0.10.0
libtpu: 0.0.40
codegen_flags: <defaults>
</compile_context>

<pallas_src>
import functools

import jax
import jax.numpy as jnp
from jax.experimental import pallas as pl
from jax.experimental.pallas import tpu as pltpu


def _mmd_tile_kernel(coef_ref, s_row_ref, t_row_ref, s_col_ref, t_col_ref,
                     o_ref, *, kernel_num, use_squaring, gram_dtype):
    """One (row-tile i, col-tile j) step of the signed multi-kernel sum.

    coef_ref             : (kernel_num,) f32 in SMEM, coef[k] = -1 / bandwidth_k
    s_row_ref, t_row_ref : (TB, D) row tiles of source / target (VMEM)
    s_col_ref, t_col_ref : (TB, D) col tiles of source / target (VMEM)
    o_ref                : (1, 1, 128) f32 per-row-tile partial, accumulated over j
    """
    j = pl.program_id(1)

    @pl.when(j == 0)
    def _():
        o_ref[...] = jnp.zeros_like(o_ref)

    s_i = s_row_ref[...].astype(jnp.float32)
    t_i = t_row_ref[...].astype(jnp.float32)
    s_j = s_col_ref[...].astype(jnp.float32)
    t_j = t_col_ref[...].astype(jnp.float32)

    d = s_i.shape[1]
    ones_row = jnp.ones((1, d), dtype=jnp.float32)

    def gram(a, b):
        # a @ b.T without materializing the transpose (MXU-native contraction).
        lhs = a if gram_dtype is None else a.astype(gram_dtype)
        rhs = b if gram_dtype is None else b.astype(gram_dtype)
        return jax.lax.dot_general(lhs, rhs, (((1,), (1,)), ((), ())),
                                   preferred_element_type=jnp.float32)

    def col_norms(x):
        # (1, TB) row of squared norms via a skinny MXU matmul (avoids an XLU
        # column->row relayout of the norm vector).
        return jax.lax.dot_general(ones_row, x * x, (((1,), (1,)), ((), ())),
                                   preferred_element_type=jnp.float32)

    # Row norms (TB, 1) and col norms (1, TB), kept in f32.
    sn_i = jnp.sum(s_i * s_i, axis=1, keepdims=True)
    tn_i = jnp.sum(t_i * t_i, axis=1, keepdims=True)
    sn_j = col_norms(s_j)
    tn_j = col_norms(t_j)

    # Pairwise squared L2 distances for the three needed blocks (clamp the tiny
    # negative residuals from cancellation; the diagonal is exactly 0 in torch).
    d_ss = jnp.maximum(sn_i + sn_j - 2.0 * gram(s_i, s_j), 0.0)   # XX block tile
    d_tt = jnp.maximum(tn_i + tn_j - 2.0 * gram(t_i, t_j), 0.0)   # YY block tile
    d_st = jnp.maximum(sn_i + tn_j - 2.0 * gram(s_i, t_j), 0.0)   # XY block tile

    # Multi-bandwidth Gaussian kernels; full-matrix sum(YX) == sum(XY), so the
    # cross term is weighted by -2 and YX is never computed.
    if use_squaring:
        # kernel_mul == 2.0: start from the LARGEST bandwidth (k = K-1) and
        # obtain all narrower kernels by repeated squaring (VPU, not EUP):
        #   exp(-d/(bw*2^(k-1))) == exp(-d/(bw*2^k)) ** 2
        c = coef_ref[kernel_num - 1]          # scalar from SMEM, = -1 / bw_{K-1}
        v_ss = jnp.exp(d_ss * c)
        v_tt = jnp.exp(d_tt * c)
        v_st = jnp.exp(d_st * c)
        acc = v_ss + v_tt - 2.0 * v_st
        for _ in range(kernel_num - 1):
            v_ss = v_ss * v_ss
            v_tt = v_tt * v_tt
            v_st = v_st * v_st
            acc = acc + v_ss + v_tt - 2.0 * v_st
    else:
        acc = jnp.zeros_like(d_ss)
        for k in range(kernel_num):
            c = coef_ref[k]                   # scalar from SMEM, = -1 / bw_k
            acc = (acc + jnp.exp(d_ss * c) + jnp.exp(d_tt * c)
                   - 2.0 * jnp.exp(d_st * c))

    partial = jnp.sum(acc, keepdims=True).reshape(1, 1, 1)        # (1, 1, 1)
    o_ref[...] = o_ref[...] + partial                             # lane-dense add


def mmd_pallas(source, target, *, kernel_mul=2.0, kernel_num=5, tile=None,
               gram_dtype=None):
    """Empirical MMD between source (B, D) and target (B, D). Returns a scalar.

    gram_dtype: optionally e.g. jnp.bfloat16 to run the Gram matmuls on the
    bf16 MXU path (norms / exp stay f32); default keeps f32 for tight accuracy.
    """
    assert source.ndim == 2 and source.shape == target.shape
    b, d = source.shape
    assert b > 0

    src = source.astype(jnp.float32)
    tgt = target.astype(jnp.float32)

    # ---- bandwidth (closed form, O(n*D)) -----------------------------------
    n = 2 * b
    sq_sum = jnp.sum(src * src) + jnp.sum(tgt * tgt)              # scalar
    col_sum = jnp.sum(src, axis=0) + jnp.sum(tgt, axis=0)         # (D,)
    l2_total = 2.0 * n * sq_sum - 2.0 * jnp.dot(col_sum, col_sum)
    bandwidth = l2_total / float(n * n - n)
    bandwidth = bandwidth / (kernel_mul ** (kernel_num // 2))
    # coef[k] = -1 / (bandwidth * kernel_mul**k). No epsilon guard: degenerate
    # identical-row inputs give NaN, matching the PyTorch reference.
    coefs = (-1.0 / (bandwidth * jnp.power(
        jnp.float32(kernel_mul),
        jnp.arange(kernel_num, dtype=jnp.float32)))).astype(jnp.float32)

    # ---- tiling over the batch axis ----------------------------------------
    if tile is None:
        tb = b
        for cand in (256, 128, 64, 32, 16, 8):   # largest multiple-of-8 divisor
            if b % cand == 0:
                tb = cand
                break
    else:
        tb = min(int(tile), b)
    assert b % tb == 0, "batch size must be divisible by the tile size"
    assert tb == b or tb % 8 == 0, "tile size must be a multiple of 8 (or == B)"
    nb = b // tb
    # TODO(synk): for very large feature dims, add a third grid axis chunking D
    # with an l2 accumulator to keep the per-step VMEM working set bounded.

    use_squaring = (float(kernel_mul) == 2.0) and kernel_num >= 1
    kernel = functools.partial(_mmd_tile_kernel, kernel_num=int(kernel_num),
                               use_squaring=use_squaring, gram_dtype=gram_dtype)

    grid_spec = pltpu.PrefetchScalarGridSpec(
        num_scalar_prefetch=0,
        grid=(nb, nb),
        in_specs=[
            pl.BlockSpec(memory_space=pltpu.MemorySpace.SMEM),      # coefs
            pl.BlockSpec((tb, d), lambda i, j: (i, 0)),             # source rows
            pl.BlockSpec((tb, d), lambda i, j: (i, 0)),             # target rows
            pl.BlockSpec((tb, d), lambda i, j: (j, 0)),             # source cols
            pl.BlockSpec((tb, d), lambda i, j: (j, 0)),             # target cols
        ],
        out_specs=pl.BlockSpec((1, 1, 128), lambda i, j: (i, 0, 0)),
    )

    partials = pl.pallas_call(
        kernel,
        out_shape=jax.ShapeDtypeStruct((nb, 1, 128), jnp.float32),
        grid_spec=grid_spec,
        compiler_params=pltpu.CompilerParams(
            dimension_semantics=("parallel", "arbitrary")),
    )(coefs, src, tgt, src, tgt)

    # Each row tile holds its partial replicated across the 128 lanes; take one.
    return jnp.sum(partials[:, 0, 0]) / float(b * b)


def mmd_reference(source, target, *, kernel_mul=2.0, kernel_num=5):
    """Pure-JAX reference mirroring the PyTorch module (default config)."""
    total = jnp.concatenate([source, target], axis=0).astype(jnp.float32)
    n = total.shape[0]
    b = source.shape[0]
    diff = total[None, :, :] - total[:, None, :]
    l2 = jnp.sum(diff * diff, axis=2)
    bw = jnp.sum(l2) / (n * n - n)
    bw = bw / (kernel_mul ** (kernel_num // 2))
    kmat = sum(jnp.exp(-l2 / (bw * kernel_mul ** i)) for i in range(kernel_num))
    xx = kmat[:b, :b]
    yy = kmat[b:, b:]
    xy = kmat[:b, b:]
    yx = kmat[b:, :b]
    return jnp.mean(xx + yy - xy - yx)


if __name__ == "__main__":
    key = jax.random.PRNGKey(0)
    k1, k2 = jax.random.split(key)
    B, D = 16, 32
    source = jax.random.normal(k1, (B, D), dtype=jnp.float32)
    target = jax.random.normal(k2, (B, D), dtype=jnp.float32) * 1.5 + 0.3

    # tile=8 -> a 2x2 grid of 8-row tiles, exercising the tiled accumulation.
    loss = mmd_pallas(source, target, tile=8)
    jax.block_until_ready(loss)

    ref = mmd_reference(source, target)
    assert jnp.allclose(loss, ref, rtol=5e-4, atol=1e-5), (loss, ref)

    # Also exercise the single-tile path (tile == B) used for small batches.
    loss_full = mmd_pallas(source, target)
    jax.block_until_ready(loss_full)
    assert jnp.allclose(loss_full, ref, rtol=5e-4, atol=1e-5), (loss_full, ref)

    print("KERNEL_OK")
</pallas_src>

<mosaic_0001>
module attributes {stable_mosaic.version = 11 : i64} {
  func.func @_mmd_tile_kernel(%arg0: i32, %arg1: i32, %arg2: memref<5xf32, #tpu.memory_space<smem>>, %arg3: memref<8x32xf32, #tpu.memory_space<vmem>>, %arg4: memref<8x32xf32, #tpu.memory_space<vmem>>, %arg5: memref<8x32xf32, #tpu.memory_space<vmem>>, %arg6: memref<8x32xf32, #tpu.memory_space<vmem>>, %arg7: memref<1x1x128xf32, #tpu.memory_space<vmem>>) attributes {dimension_semantics = [#tpu.dimension_semantics<parallel>, #tpu.dimension_semantics<arbitrary>], iteration_bounds = array<i64: 2, 2>, scalar_prefetch = 0 : i64, scratch_operands = 0 : i64, tpu.core_type = #tpu.core_type<tc>, window_params = [{transform_indices = @transform_0, window_bounds = array<i64: 5>}, {transform_indices = @transform_1, window_bounds = array<i64: 8, 32>}, {transform_indices = @transform_2, window_bounds = array<i64: 8, 32>}, {transform_indices = @transform_3, window_bounds = array<i64: 8, 32>}, {transform_indices = @transform_4, window_bounds = array<i64: 8, 32>}, {transform_indices = @transform_5, window_bounds = array<i64: 1, 1, 128>}]} {
    %c0_i32 = arith.constant 0 : i32
    %0 = arith.cmpi eq, %arg1, %c0_i32 : i32
    %1 = arith.extui %0 : i1 to i32
    %c0_i32_0 = arith.constant 0 : i32
    %2 = arith.cmpi ne, %1, %c0_i32_0 : i32
    scf.if %2 {
      %cst_33 = arith.constant 0.000000e+00 : f32
      %101 = vector.broadcast %cst_33 : f32 to vector<1x1x128xf32>
      %c0_34 = arith.constant 0 : index
      %c0_35 = arith.constant 0 : index
      %c0_36 = arith.constant 0 : index
      %102 = vector.load %arg7[%c0_34, %c0_35, %c0_36] : memref<1x1x128xf32, #tpu.memory_space<vmem>>, vector<1x1x128xf32>
      tpu.vector_store %arg7[%c0_34, %c0_35, %c0_36], %101 {strides = array<i32>} : memref<1x1x128xf32, #tpu.memory_space<vmem>>, vector<1x1x128xf32>,
    } else {
    }
    %c0 = arith.constant 0 : index
    %c0_1 = arith.constant 0 : index
    %3 = vector.load %arg3[%c0, %c0_1] : memref<8x32xf32, #tpu.memory_space<vmem>>, vector<8x32xf32>
    %c0_2 = arith.constant 0 : index
    %c0_3 = arith.constant 0 : index
    %4 = vector.load %arg4[%c0_2, %c0_3] : memref<8x32xf32, #tpu.memory_space<vmem>>, vector<8x32xf32>
    %c0_4 = arith.constant 0 : index
    %c0_5 = arith.constant 0 : index
    %5 = vector.load %arg5[%c0_4, %c0_5] : memref<8x32xf32, #tpu.memory_space<vmem>>, vector<8x32xf32>
    %c0_6 = arith.constant 0 : index
    %c0_7 = arith.constant 0 : index
    %6 = vector.load %arg6[%c0_6, %c0_7] : memref<8x32xf32, #tpu.memory_space<vmem>>, vector<8x32xf32>
    %cst = arith.constant 1.000000e+00 : f32
    %7 = vector.broadcast %cst : f32 to vector<1x32xf32>
    %8 = arith.mulf %3, %3 : vector<8x32xf32>
    %cst_8 = arith.constant dense<0.000000e+00> : vector<8xf32>
    %9 = vector.multi_reduction <add>, %8, %cst_8 [1] : vector<8x32xf32> to vector<8xf32>
    %10 = vector.shape_cast %9 : vector<8xf32> to vector<8x1xf32>
    %11 = arith.mulf %4, %4 : vector<8x32xf32>
    %cst_9 = arith.constant dense<0.000000e+00> : vector<8xf32>
    %12 = vector.multi_reduction <add>, %11, %cst_9 [1] : vector<8x32xf32> to vector<8xf32>
    %13 = vector.shape_cast %12 : vector<8xf32> to vector<8x1xf32>
    %14 = arith.mulf %5, %5 : vector<8x32xf32>
    %cst_10 = arith.constant dense<0.000000e+00> : vector<1x8xf32>
    %15 = tpu.matmul %7, %14, %cst_10 {dimension_numbers = #tpu.dot_dimension_numbers<[1], [1], [0], [0], [0, 0, 1, 0], [], []>} : vector<1x32xf32>, vector<8x32xf32>, vector<1x8xf32> -> vector<1x8xf32>
    %16 = arith.mulf %6, %6 : vector<8x32xf32>
    %cst_11 = arith.constant dense<0.000000e+00> : vector<1x8xf32>
    %17 = tpu.matmul %7, %16, %cst_11 {dimension_numbers = #tpu.dot_dimension_numbers<[1], [1], [0], [0], [0, 0, 1, 0], [], []>} : vector<1x32xf32>, vector<8x32xf32>, vector<1x8xf32> -> vector<1x8xf32>
    %18 = vector.broadcast %10 : vector<8x1xf32> to vector<8x8xf32>
    %19 = vector.broadcast %15 : vector<1x8xf32> to vector<8x8xf32>
    %20 = arith.addf %18, %19 : vector<8x8xf32>
    %cst_12 = arith.constant dense<0.000000e+00> : vector<8x8xf32>
    %21 = tpu.matmul %3, %5, %cst_12 {dimension_numbers = #tpu.dot_dimension_numbers<[1], [1], [0], [0], [0, 0, 1, 0], [], []>} : vector<8x32xf32>, vector<8x32xf32>, vector<8x8xf32> -> vector<8x8xf32>
    %cst_13 = arith.constant 2.000000e+00 : f32
    %22 = vector.broadcast %cst_13 : f32 to vector<8x8xf32>
    %23 = arith.mulf %22, %21 : vector<8x8xf32>
    %24 = arith.subf %20, %23 : vector<8x8xf32>
    %cst_14 = arith.constant 0.000000e+00 : f32
    %25 = vector.broadcast %cst_14 : f32 to vector<8x8xf32>
    %26 = arith.maximumf %24, %25 : vector<8x8xf32>
    %27 = vector.broadcast %13 : vector<8x1xf32> to vector<8x8xf32>
    %28 = vector.broadcast %17 : vector<1x8xf32> to vector<8x8xf32>
    %29 = arith.addf %27, %28 : vector<8x8xf32>
    %cst_15 = arith.constant dense<0.000000e+00> : vector<8x8xf32>
    %30 = tpu.matmul %4, %6, %cst_15 {dimension_numbers = #tpu.dot_dimension_numbers<[1], [1], [0], [0], [0, 0, 1, 0], [], []>} : vector<8x32xf32>, vector<8x32xf32>, vector<8x8xf32> -> vector<8x8xf32>
    %cst_16 = arith.constant 2.000000e+00 : f32
    %31 = vector.broadcast %cst_16 : f32 to vector<8x8xf32>
    %32 = arith.mulf %31, %30 : vector<8x8xf32>
    %33 = arith.subf %29, %32 : vector<8x8xf32>
    %cst_17 = arith.constant 0.000000e+00 : f32
    %34 = vector.broadcast %cst_17 : f32 to vector<8x8xf32>
    %35 = arith.maximumf %33, %34 : vector<8x8xf32>
    %36 = vector.broadcast %10 : vector<8x1xf32> to vector<8x8xf32>
    %37 = vector.broadcast %17 : vector<1x8xf32> to vector<8x8xf32>
    %38 = arith.addf %36, %37 : vector<8x8xf32>
    %cst_18 = arith.constant dense<0.000000e+00> : vector<8x8xf32>
    %39 = tpu.matmul %3, %6, %cst_18 {dimension_numbers = #tpu.dot_dimension_numbers<[1], [1], [0], [0], [0, 0, 1, 0], [], []>} : vector<8x32xf32>, vector<8x32xf32>, vector<8x8xf32> -> vector<8x8xf32>
    %cst_19 = arith.constant 2.000000e+00 : f32
    %40 = vector.broadcast %cst_19 : f32 to vector<8x8xf32>
    %41 = arith.mulf %40, %39 : vector<8x8xf32>
    %42 = arith.subf %38, %41 : vector<8x8xf32>
    %cst_20 = arith.constant 0.000000e+00 : f32
    %43 = vector.broadcast %cst_20 : f32 to vector<8x8xf32>
    %44 = arith.maximumf %42, %43 : vector<8x8xf32>
    %c4 = arith.constant 4 : index
    %45 = memref.load %arg2[%c4] : memref<5xf32, #tpu.memory_space<smem>>
    %46 = vector.broadcast %45 : f32 to vector<8x8xf32>
    %47 = arith.mulf %26, %46 : vector<8x8xf32>
    %48 = math.exp %47 : vector<8x8xf32>
    %49 = vector.broadcast %45 : f32 to vector<8x8xf32>
    %50 = arith.mulf %35, %49 : vector<8x8xf32>
    %51 = math.exp %50 : vector<8x8xf32>
    %52 = vector.broadcast %45 : f32 to vector<8x8xf32>
    %53 = arith.mulf %44, %52 : vector<8x8xf32>
    %54 = math.exp %53 : vector<8x8xf32>
    %55 = arith.addf %48, %51 : vector<8x8xf32>
    %cst_21 = arith.constant 2.000000e+00 : f32
    %56 = vector.broadcast %cst_21 : f32 to vector<8x8xf32>
    %57 = arith.mulf %56, %54 : vector<8x8xf32>
    %58 = arith.subf %55, %57 : vector<8x8xf32>
    %59 = arith.mulf %48, %48 : vector<8x8xf32>
    %60 = arith.mulf %51, %51 : vector<8x8xf32>
    %61 = arith.mulf %54, %54 : vector<8x8xf32>
    %62 = arith.addf %58, %59 : vector<8x8xf32>
    %63 = arith.addf %62, %60 : vector<8x8xf32>
    %cst_22 = arith.constant 2.000000e+00 : f32
    %64 = vector.broadcast %cst_22 : f32 to vector<8x8xf32>
    %65 = arith.mulf %64, %61 : vector<8x8xf32>
    %66 = arith.subf %63, %65 : vector<8x8xf32>
    %67 = arith.mulf %59, %59 : vector<8x8xf32>
    %68 = arith.mulf %60, %60 : vector<8x8xf32>
    %69 = arith.mulf %61, %61 : vector<8x8xf32>
    %70 = arith.addf %66, %67 : vector<8x8xf32>
    %71 = arith.addf %70, %68 : vector<8x8xf32>
    %cst_23 = arith.constant 2.000000e+00 : f32
    %72 = vector.broadcast %cst_23 : f32 to vector<8x8xf32>
    %73 = arith.mulf %72, %69 : vector<8x8xf32>
    %74 = arith.subf %71, %73 : vector<8x8xf32>
    %75 = arith.mulf %67, %67 : vector<8x8xf32>
    %76 = arith.mulf %68, %68 : vector<8x8xf32>
    %77 = arith.mulf %69, %69 : vector<8x8xf32>
    %78 = arith.addf %74, %75 : vector<8x8xf32>
    %79 = arith.addf %78, %76 : vector<8x8xf32>
    %cst_24 = arith.constant 2.000000e+00 : f32
    %80 = vector.broadcast %cst_24 : f32 to vector<8x8xf32>
    %81 = arith.mulf %80, %77 : vector<8x8xf32>
    %82 = arith.subf %79, %81 : vector<8x8xf32>
    %83 = arith.mulf %75, %75 : vector<8x8xf32>
    %84 = arith.mulf %76, %76 : vector<8x8xf32>
    %85 = arith.mulf %77, %77 : vector<8x8xf32>
    %86 = arith.addf %82, %83 : vector<8x8xf32>
    %87 = arith.addf %86, %84 : vector<8x8xf32>
    %cst_25 = arith.constant 2.000000e+00 : f32
    %88 = vector.broadcast %cst_25 : f32 to vector<8x8xf32>
    %89 = arith.mulf %88, %85 : vector<8x8xf32>
    %90 = arith.subf %87, %89 : vector<8x8xf32>
    %91 = vector.shape_cast %90 : vector<8x8xf32> to vector<1x8x8xf32>
    %cst_26 = arith.constant dense<0.000000e+00> : vector<1xf32>
    %92 = vector.multi_reduction <add>, %91, %cst_26 [1, 2] : vector<1x8x8xf32> to vector<1xf32>
    %93 = vector.shape_cast %92 : vector<1xf32> to vector<1x1x1xf32>
    %94 = vector.extract %93[0, 0, 0] : f32 from vector<1x1x1xf32>
    %95 = vector.broadcast %94 : f32 to vector<1x1xf32>
    %96 = vector.shape_cast %95 : vector<1x1xf32> to vector<1x1x1xf32>
    %c0_27 = arith.constant 0 : index
    %c0_28 = arith.constant 0 : index
    %c0_29 = arith.constant 0 : index
    %97 = vector.load %arg7[%c0_27, %c0_28, %c0_29] : memref<1x1x128xf32, #tpu.memory_space<vmem>>, vector<1x1x128xf32>
    %98 = vector.broadcast %96 : vector<1x1x1xf32> to vector<1x1x128xf32>
    %99 = arith.addf %97, %98 : vector<1x1x128xf32>
    %c0_30 = arith.constant 0 : index
    %c0_31 = arith.constant 0 : index
    %c0_32 = arith.constant 0 : index
    %100 = vector.load %arg7[%c0_30, %c0_31, %c0_32] : memref<1x1x128xf32, #tpu.memory_space<vmem>>, vector<1x1x128xf32>
    tpu.vector_store %arg7[%c0_30, %c0_31, %c0_32], %99 {strides = array<i32>} : memref<1x1x128xf32, #tpu.memory_space<vmem>>, vector<1x1x128xf32>,
    return
  }
  func.func @transform_0(%arg0: i32, %arg1: i32) -> i32 {
    %c0_i32 = arith.constant 0 : i32
    %c0_i32_0 = arith.constant 0 : i32
    return %c0_i32 : i32
  }
  func.func @transform_1(%arg0: i32, %arg1: i32) -> (i32, i32) {
    %c0_i32 = arith.constant 0 : i32
    %c0_i32_0 = arith.constant 0 : i32
    return %arg0, %c0_i32 : i32, i32
  }
  func.func @transform_2(%arg0: i32, %arg1: i32) -> (i32, i32) {
    %c0_i32 = arith.constant 0 : i32
    %c0_i32_0 = arith.constant 0 : i32
    return %arg0, %c0_i32 : i32, i32
  }
  func.func @transform_3(%arg0: i32, %arg1: i32) -> (i32, i32) {
    %c0_i32 = arith.constant 0 : i32
    %c0_i32_0 = arith.constant 0 : i32
    return %arg1, %c0_i32 : i32, i32
  }
  func.func @transform_4(%arg0: i32, %arg1: i32) -> (i32, i32) {
    %c0_i32 = arith.constant 0 : i32
    %c0_i32_0 = arith.constant 0 : i32
    return %arg1, %c0_i32 : i32, i32
  }
  func.func @transform_5(%arg0: i32, %arg1: i32) -> (i32, i32, i32) {
    %c0_i32 = arith.constant 0 : i32
    %c0_i32_0 = arith.constant 0 : i32
    %c0_i32_1 = arith.constant 0 : i32
    return %arg0, %c0_i32, %c0_i32_0 : i32, i32, i32
  }
}

</mosaic_0001>

<bundles_post_ra>
// kernel: tpu_custom_call.1
= control target key start
LH: loop header
LB: loop body
LE: loop exit
PB: predicated region body
PF: predicated region fallthrough
CT: control target
= control target key end

     0   :  { %s1957_s0 = inlined_call_operand.hbm [shape: f32[5], index: 0, kind: input, shape index: {}]   ;;  %s1958_s1 = inlined_call_operand.hbm [shape: f32[16,32], index: 1, kind: input, shape index: {}]   ;;  %s1959_s2 = inlined_call_operand.hbm [shape: f32[16,32], index: 2, kind: input, shape index: {}]   ;;  %s1960_s3 = inlined_call_operand.hbm [shape: f32[16,32], index: 3, kind: input, shape index: {}]   ;;  %s1961_s4 = inlined_call_operand.hbm [shape: f32[16,32], index: 4, kind: input, shape index: {}]   ;;  %s1962_s5 = inlined_call_operand.hbm [shape: f32[2,1,128], index: 5, kind: output, shape index: {}]  }
   0x1   :  { %1983 = sst [smem:[#allocation24_spill]] %s1957_s0 }
   0x2   :  { %1984 = sst [smem:[#allocation25_spill]] %s1958_s1 }
   0x3   :  { %1985 = sst [smem:[#allocation26_spill]] %s1959_s2 }
   0x4   :  { %1986 = sst [smem:[#allocation27_spill]] %s1960_s3 }
   0x5   :  { %1987 = sst [smem:[#allocation28_spill]] %s1962_s5 }
   0x6   :  { %10 = vsyncpa [#allocation5], 0 }
   0x7   :  { %11 = vsyncpa [#allocation3], 0 }
   0x8   :  { %13 = vsyncpa [#allocation3 + $0x1], 0 }
   0x9   :  { %14 = vsyncpa [#allocation8], 0 }
   0xa   :  { %16 = vsyncpa [#allocation8 + $0x1], 0 }
   0xb   :  { %17 = vsyncpa [#allocation11], 0 }
   0xc   :  { %19 = vsyncpa [#allocation11 + $0x1], 0 }
   0xd   :  { %20 = vsyncpa [#allocation4], 0 }
   0xe   :  { %22 = vsyncpa [#allocation4 + $0x1], 0  ;;  %s1529_s18 = smov 0   ;;  %s1531_s19 = smov 0  }
   0xf   :  { %s1533_s20 = smov 0   ;;  %s1535_s21 = smov 0  }
  0x10   :  { %s1537_s22 = smov 0   ;;  %s1539_s23 = smov 0  }
  0x11   :  { %s1541_s24 = smov 0   ;;  %s1543_s25 = smov 0  }
  0x12   :  { %s1545_s26 = smov 0   ;;  %s1547_s27 = smov 0  }
  0x13   :  { %s1549_s28 = smov 0  }
  0x14 LB: > { %1988 = sst [smem:[#allocation19_spill]] %s1459_s21  ;;  %p1964_p0 = scmp.ne.s32.totalorder %s1467_s23, %s1463_s22  ;;  %s1487_s28 = sphi %s1549_s28, %s2041_s28   ;;  %s1483_s27 = sphi %s1547_s27, %s2040_s27   ;;  %s1479_s26 = sphi %s1545_s26, %s2039_s26   ;;  %s1475_s25 = sphi %s1543_s25, %s2038_s25   ;;  %s1471_s24 = sphi %s1541_s24, %s2037_s24   ;;  %s1467_s23 = sphi %s1539_s23, %s2036_s23   ;;  %s1463_s22 = sphi %s1537_s22, %s2035_s22   ;;  %s1459_s21 = sphi %s1535_s21, %s2034_s21   ;;  %s1455_s20 = sphi %s1533_s20, %s2033_s20   ;;  %s1451_s19 = sphi %s1531_s19, %s2032_s19   ;;  %s1447_s18 = sphi %s1529_s18, %s2031_s18  }
  0x15   : > { %1989 = sst [smem:[#allocation20_spill]] %s1487_s28  ;;  %p76_p1 = scmp.eq.s32.totalorder %s1487_s28, 0 }
  0x16   : > { %p127_p2 = scmp.ne.s32.totalorder %s1455_s20, %s1451_s19  ;;  %p1114_p4 = scmp.lt.s32.totalorder %s1487_s28, 4 }
  0x17   : > { %p77_p3 = por %p76_p1, %p1964_p0  ;;  %s1963_s6 = sand.u32 1, %s1467_s23  }
  0x18   : > { %p129_p5 = por %p127_p2, %p76_p1  ;;  %s1598_s7 = sshll.u32 %s1963_s6, 3 }
  0x19   : > { %s1013_s8 = sshll.u32 %s1483_s27, 7  ;;  %p1601_p6 = pnand %p1114_p4, %p77_p3 }
  0x1a   : > { %s236_s10 = sand.u32 1, %s1487_s28   ;;  %s1991_s2 = sld [smem:[#allocation26_spill]] }
  0x1b   : > { %s240_s14 = scalar_lea.vmem [#allocation7], %s1598_s7  ;;  %p1614_p7 = pnand %p1114_p4, %p129_p5 }
  0x1c   : > { %s247_s15 = sshll.u32 %s240_s14, 4  ;;  %s1620_s17 = scalar_lea.sflag [#allocation8], %s236_s10  ;;  %s1618_s15 = int_to_ptr.vmem [resolvable:$true] %s247_s15 }
  0x1d   : > { %s1992_s16 = scalar_select %p1614_p7, 1, 0 }
  0x1e   : > { %p1965_p9 = pneg %p1601_p6 }
  0x20   : > { %s1611_s13 = scalar_lea.hbm %s1991_s2, %s1013_s8  ;;  %s1221_s14 = scalar_lea.hbm %s1991_s2, 256 }
  0x21   : > { %s1216_s30 = scalar_lea.hbm %s1611_s13, 128  ;;  %p1222_p12 = scmp.lt.u32.totalorder %s1611_s13, %s1991_s2 }
  0x22   : > { %p1217_p8 = scmp.ne.s32.totalorder %s1611_s13, %s1216_s30  ;;  %p1223_p13 = scmp.lt.u32.totalorder %s1221_s14, %s1216_s30 }
  0x23   : > { %p1225_p2 = scmp.lt.u32.totalorder %s1216_s30, %s1611_s13 }
  0x24   : > { %p1219_p10 = pnand %p1965_p9, %p1217_p8  ;;  %p1224_p1 = por %p1223_p13, %p1222_p12 }
  0x26   : > { %p1220_p11 = pneg %p1219_p10  ;;  %p1226_p3 = por %p1225_p2, %p1224_p1 }
  0x28   : > { %p1227_p4 = pnand %p1226_p3, %p1220_p11 }
  0x2a   : > { %1230 = shalt.err (!%p1227_p4)
}
  0x2b   : > { %s1231_s10 = scalar_lea.vmem %s1618_s15, 128  ;;  %s1489_s11 = smov [#allocation7]  }
  0x2c   : > { %p1232_p5 = scmp.ne.s32.totalorder %s1618_s15, %s1231_s10  ;;  %s1236_s12 = sshll.u32 %s1489_s11, 4  ;;  %s1237_s12 = int_to_ptr.vmem [resolvable:$false] %s1236_s12 }
  0x2d   : > { %s1238_s29 = scalar_lea.vmem %s1237_s12, 256  ;;  %p1239_p0 = scmp.lt.s32.totalorder %s1618_s15, %s1237_s12 }
  0x2e   : > { %p1234_p8 = pnand %p1232_p5, %p1965_p9  ;;  %p1240_p12 = scmp.lt.s32.totalorder %s1238_s29, %s1231_s10 }
  0x30   : > { %p1235_p10 = pneg %p1234_p8  ;;  %p1241_p13 = por %p1240_p12, %p1239_p0 }
  0x32   : > { %p1242_p1 = pnand %p1241_p13, %p1235_p10 }
  0x34   : > { %1245 = shalt.err (!%p1242_p1)
}
  0x35   : > { %1102 = dma.hbm_to_vmem [thread:$0]  (!%p1601_p6), %s1611_s13, 128, %s1618_s15, %s1620_s17  }
  0x36   : > { %s1649_s30 = sadd.s32 4294967295, %s1487_s28   ;;  %s1008_s6 = sadd.s32 4294967294, %s1487_s28  }
  0x37   : > { %p81_p0 = scmp.ne.s32.totalorder %s1463_s22, %s1459_s21  ;;  %p1974_p11 = scmp.eq.s32.totalorder %s1649_s30, 0 }
  0x38   : > { %p133_p2 = scmp.ne.s32.totalorder %s1451_s19, %s1447_s18  ;;  %p183_p3 = scmp.eq.s32.totalorder %s1649_s30, 3 }
  0x39   : > { %p1660_p4 = por %p1974_p11, %p81_p0  ;;  %p189_p5 = scmp.eq.s32.totalorder %s1008_s6, 3 }
  0x3a   : > { %p1666_p8 = por %p133_p2, %p1974_p11  ;;  %p1995_p10 = scmp.ne.s32.totalorder %s1467_s23, %s1463_s22 }
  0x3b   : > { %s1993_s14 = scalar_select %p1660_p4, 1, 0 }
  0x3c   : > { %s1994_s13 = scalar_select %p1666_p8, 1, 0 }
  0x3d   : > { %p1673_p12 = por %p183_p3, %p1995_p10  ;;  %p1677_p13 = por %p189_p5, %p81_p0 }
  0x3e   : > { %p1009_p1 = scmp.ge.s32.totalorder %s1487_s28, 1  ;;  %p196_p9 = scmp.lt.s32.totalorder %s1487_s28, 5 }
  0x3f   : > { %s1996_s15 = scalar_select %p1673_p12, 1, 0 }
  0x40   : > { %s1998_s18 = scalar_select %p1677_p13, 1, 0 }
  0x41   : > { %1997 = sst [smem:[#allocation21_spill]] %s1996_s15  ;;  %p1683_p7 = pnand %p1009_p1, %p196_p9 }
  0x42   : > { %1999 = sst [smem:[#allocation22_spill]] %s1998_s18  ;;  %s222_s6 = scalar_lea.vmem [#allocation6], %s1598_s7 }
  0x43   : > { %s2000_s10 = scalar_select %p1683_p7, 1, 0 }
  0x44   : > { %s2001_s1 = sld [smem:[#allocation25_spill]]  ;;  %s229_s2 = sshll.u32 %s222_s6, 4  ;;  %s230_s2 = int_to_ptr.vmem [resolvable:$true] %s229_s2 }
  0x45   : > { %s2002_s18 = sand.u32 1, %s1467_s23   ;;  %p2003_p2 = pneg %p1601_p6 }
  0x46   : > { %s219_s21 = scalar_lea.sflag [#allocation3], %s2002_s18 }
  0x4a   : > { %s1692_s29 = scalar_lea.hbm %s2001_s1, %s1013_s8  ;;  %s1251_s12 = scalar_lea.hbm %s2001_s1, 256 }
  0x4b   : > { %s1246_s28 = scalar_lea.hbm %s1692_s29, 128  ;;  %p1252_p10 = scmp.lt.u32.totalorder %s1692_s29, %s2001_s1 }
  0x4c   : > { %p1247_p9 = scmp.ne.s32.totalorder %s1692_s29, %s1246_s28  ;;  %p1253_p1 = scmp.lt.u32.totalorder %s1251_s12, %s1246_s28 }
  0x4d   : > { %p1255_p0 = scmp.lt.u32.totalorder %s1246_s28, %s1692_s29 }
  0x4e   : > { %p1249_p3 = pnand %p1247_p9, %p2003_p2  ;;  %p1254_p11 = por %p1253_p1, %p1252_p10 }
  0x50   : > { %p1250_p5 = pneg %p1249_p3  ;;  %p1256_p13 = por %p1255_p0, %p1254_p11 }
  0x52   : > { %p1257_p12 = pnand %p1256_p13, %p1250_p5 }
  0x54   : > { %1260 = shalt.err (!%p1257_p12)
}
  0x55   : > { %s1261_s7 = scalar_lea.vmem %s230_s2, 128  ;;  %p2004_p9 = pmov %p2003_p2 }
  0x56   : > { %p1262_p8 = scmp.ne.s32.totalorder %s230_s2, %s1261_s7  ;;  %s1490_s18 = smov [#allocation6]  }
  0x57   : > { %s1266_s6 = sshll.u32 %s1490_s18, 4  ;;  %s1267_s6 = int_to_ptr.vmem [resolvable:$false] %s1266_s6 }
  0x58   : > { %p1264_p2 = pnand %p1262_p8, %p2004_p9  ;;  %s1268_s11 = scalar_lea.vmem %s1267_s6, 256 }
  0x59   : > { %p1269_p4 = scmp.lt.s32.totalorder %s230_s2, %s1267_s6  ;;  %p1270_p7 = scmp.lt.s32.totalorder %s1268_s11, %s1261_s7 }
  0x5a   : > { %p1265_p3 = pneg %p1264_p2 }
  0x5b   : > { %p1271_p1 = por %p1270_p7, %p1269_p4 }
  0x5d   : > { %p1272_p10 = pnand %p1271_p1, %p1265_p3 }
  0x5f   : > { %1275 = shalt.err (!%p1272_p10)
}
  0x60   : > { %1099 = dma.hbm_to_vmem [thread:$0]  (!%p1601_p6), %s1692_s29, 128, %s230_s2, %s219_s21  }
  0x61   : > { %p2005_p11 = scmp.eq.s32.totalorder %s1649_s30, 0  ;;  %p2006_p8 = scmp.ne.s32.totalorder %s2000_s10, 0 }
  0x62   : > { %s120_s5 = sadd.s32 1, %s1455_s20  ;;  %s37_s28 = sadd.s32 1, %s1479_s26 }
  0x63   : > { %p2007_p12 = pneg %p2006_p8  ;;  %s2008_s0 = sld [smem:[#allocation24_spill]] }
  0x65   : > { %p1093_p13 = pnand %p2007_p12, %p2005_p11 }
  0x67   : > { %p1278_p4 = pneg %p1093_p13 }
  0x69   : > { %s1276_s12 = scalar_lea.hbm %s2008_s0, 16 }
  0x6a   : > { %p1277_p7 = scmp.ne.s32.totalorder %s2008_s0, %s1276_s12  ;;  %p1283_p6 = scmp.lt.u32.totalorder %s1276_s12, %s2008_s0 }
  0x6c   : > { %p1279_p0 = pnand %p1278_p4, %p1277_p7 }
  0x6e   : > { %p1280_p5 = pneg %p1279_p0 }
  0x70   : > { %p1285_p9 = pnand %p1283_p6, %p1280_p5 }
  0x72   : > { %1288 = shalt.err (!%p1285_p9)
}
  0x73   : > { %s1491_s2 = smov [#allocation2]   ;;  %p38_p2 = scmp.ge.s32.totalorder %s37_s28, 2 }
  0x74   : > { %1095 = dma.hbm_to_smem (!%p1093_p13), %s2008_s0, 16, %s1491_s2, [#allocation5]  }
  0x75   : > { %s1980_s11 = sand.u32 1, %s1455_s20   ;;  %s1981_s8 = sshll.u32 %s1479_s26, 7 }
  0x76   : > { %s1740_s15 = sshll.u32 %s1980_s11, 3  ;;  %s2043_s28 = smov (%p38_p2, %s37_s28), 0 }
  0x77   : > { %s2009_s12 = sadd.s32 1, %s1483_s27  ;;  %s117_s7 = ssub.s32 %s1479_s26, %s2043_s28 }
  0x78   : > { %s2045_s12 = smov (!%p38_p2, %s2009_s12), %s1483_s27  ;;  %p118_p1 = scmp.eq.s32.totalorder %s117_s7, 0 }
  0x79   : > { %p42_p3 = scmp.ge.s32.totalorder %s2045_s12, 2  ;;  %s2010_s3 = sld [smem:[#allocation27_spill]] }
  0x7a   : > { %s258_s2 = scalar_lea.vmem [#allocation9], %s1740_s15  ;;  %p2013_p12 = scmp.ne.s32.totalorder %s1992_s16, 0 }
  0x7b   : > { %s265_s21 = sshll.u32 %s258_s2, 4  ;;  %s2047_s12 = smov (%p42_p3, %s2045_s12), 0  ;;  %s1765_s21 = int_to_ptr.vmem [resolvable:$true] %s265_s21 }
  0x7c   : > { %2011 = sst [smem:[#allocation23_spill]] %s2047_s12  ;;  %s65_s11 = ssub.s32 %s1483_s27, %s2047_s12 }
  0x7d   : > { %s1761_s29 = scalar_select %p118_p1, %s1455_s20, %s120_s5  }
  0x7e   : > { %p1767_p10 = scmp.eq.s32.totalorder %s65_s11, 0  ;;  %p1291_p13 = pneg %p2013_p12 }
  0x7f   : > { %s1755_s6 = scalar_lea.hbm %s2010_s3, %s1981_s8  ;;  %s1294_s5 = scalar_lea.hbm %s2010_s3, 256 }
  0x80   : > { %s1289_s18 = scalar_lea.hbm %s1755_s6, 128  ;;  %p1295_p0 = scmp.lt.u32.totalorder %s1755_s6, %s2010_s3 }
  0x81   : > { %p1290_p11 = scmp.ne.s32.totalorder %s1755_s6, %s1289_s18  ;;  %p1296_p5 = scmp.lt.u32.totalorder %s1294_s5, %s1289_s18 }
  0x82   : > { %p1298_p9 = scmp.lt.u32.totalorder %s1289_s18, %s1755_s6 }
  0x83   : > { %p1292_p7 = pnand %p1291_p13, %p1290_p11  ;;  %p1297_p6 = por %p1296_p5, %p1295_p0 }
  0x85   : > { %p1293_p4 = pneg %p1292_p7  ;;  %p1299_p2 = por %p1298_p9, %p1297_p6 }
  0x87   : > { %p1300_p3 = pnand %p1299_p2, %p1293_p4 }
  0x89   : > { %1303 = shalt.err (!%p1300_p3)
}
  0x8a   : > { %s1304_s11 = scalar_lea.vmem %s1765_s21, 128  ;;  %s1492_s9 = smov [#allocation9]  }
  0x8b   : > { %p1305_p1 = scmp.ne.s32.totalorder %s1765_s21, %s1304_s11  ;;  %s1309_s2 = sshll.u32 %s1492_s9, 4  ;;  %s1310_s2 = int_to_ptr.vmem [resolvable:$false] %s1309_s2 }
  0x8c   : > { %s1311_s0 = scalar_lea.vmem %s1310_s2, 256  ;;  %p1312_p8 = scmp.lt.s32.totalorder %s1765_s21, %s1310_s2 }
  0x8d   : > { %p1307_p11 = pnand %p1305_p1, %p1291_p13  ;;  %p1313_p0 = scmp.lt.s32.totalorder %s1311_s0, %s1304_s11 }
  0x8f   : > { %p1308_p7 = pneg %p1307_p11  ;;  %p1314_p5 = por %p1313_p0, %p1312_p8 }
  0x91   : > { %p1315_p6 = pnand %p1314_p5, %p1308_p7 }
  0x93   : > { %1318 = shalt.err (!%p1315_p6)
}
  0x94   : > { %1105 = dma.hbm_to_vmem [thread:$0]  (!%p2013_p12), %s1755_s6, 128, %s1765_s21, %s1620_s17  }
  0x95   : > { %s2014_s8 = sadd.s32 1, %s1467_s23  ;;  %s2015_s5 = sshll.u32 %s1479_s26, 7 }
  0x96   : > { %s1802_s18 = scalar_select %p1767_p10, %s1467_s23, %s2014_s8  }
  0x97   : > { %s1809_s2 = scalar_lea.hbm %s1961_s4, %s2015_s5  ;;  %s276_s0 = scalar_lea.vmem [#allocation10], %s1740_s15 }
  0x98   : > { %s283_s1 = sshll.u32 %s276_s0, 4  ;;  %s2016_s3 = sand.u32 1, %s1455_s20   ;;  %s284_s1 = int_to_ptr.vmem [resolvable:$true] %s283_s1 }
  0x99   : > { %s273_s12 = scalar_lea.sflag [#allocation11], %s2016_s3  ;;  %s1319_s17 = scalar_lea.hbm %s1809_s2, 128 }
  0x9a   : > { %p1320_p8 = scmp.ne.s32.totalorder %s1809_s2, %s1319_s17  ;;  %s1324_s7 = scalar_lea.hbm %s1961_s4, 256 }
  0x9b   : > { %p1325_p9 = scmp.lt.u32.totalorder %s1809_s2, %s1961_s4  ;;  %p1326_p2 = scmp.lt.u32.totalorder %s1324_s7, %s1319_s17 }
  0x9c   : > { %p1322_p10 = pnand %p1320_p8, %p1291_p13  ;;  %p1328_p1 = scmp.lt.u32.totalorder %s1319_s17, %s1809_s2 }
  0x9d   : > { %p1327_p3 = por %p1326_p2, %p1325_p9 }
  0x9e   : > { %p1323_p4 = pneg %p1322_p10 }
  0x9f   : > { %p1329_p11 = por %p1328_p1, %p1327_p3 }
  0xa1   : > { %p1330_p7 = pnand %p1329_p11, %p1323_p4 }
  0xa3   : > { %1333 = shalt.err (!%p1330_p7)
}
  0xa4   : > { %s1334_s3 = scalar_lea.vmem %s284_s1, 128  ;;  %s1493_s15 = smov [#allocation10]  }
  0xa5   : > { %p1335_p0 = scmp.ne.s32.totalorder %s284_s1, %s1334_s3  ;;  %s1339_s11 = sshll.u32 %s1493_s15, 4  ;;  %s1340_s11 = int_to_ptr.vmem [resolvable:$false] %s1339_s11 }
  0xa6   : > { %s1341_s9 = scalar_lea.vmem %s1340_s11, 256  ;;  %p1342_p8 = scmp.lt.s32.totalorder %s284_s1, %s1340_s11 }
  0xa7   : > { %p1337_p5 = pnand %p1335_p0, %p1291_p13  ;;  %p1343_p10 = scmp.lt.s32.totalorder %s1341_s9, %s1334_s3 }
  0xa9   : > { %p1338_p6 = pneg %p1337_p5  ;;  %p1344_p2 = por %p1343_p10, %p1342_p8 }
  0xab   : > { %p1345_p9 = pnand %p1344_p2, %p1338_p6 }
  0xad   : > { %1348 = shalt.err (!%p1345_p9)
}
  0xae   : > { %1108 = dma.hbm_to_vmem [thread:$0]  (!%p2013_p12), %s1809_s2, 128, %s284_s1, %s273_s12  }
  0xaf   : > { %p2017_p4 = scmp.ne.s32.totalorder %s2000_s10, 0 }
  0xb0   : > { %p2018_p3 = scmp.eq.s32.totalorder (!%p2017_p4), %s1649_s30, 0 }
  0xb1   : > { %292 = sbr.rel (%p2017_p4) target bundleno = 706 (0x2c2), region = 40 }
  0xb8   : > { %1422 = dma.done.wait (%p2018_p3), [#allocation5], 16   ;;  %p2019_p13 = pmov %p2018_p3 }
  0xb9   : > { %s1840_s0 = sand.u32 1, %s1463_s22   ;;  %p2020_p12 = scmp.ne.s32.totalorder %s1993_s14, 0 }
  0xba   : > { %1424 = vsyncadd (%p2019_p13), [#allocation5], 4294967280  ;;  %s1022_s17 = sshll.u32 %s1840_s0, 3  ;;  %s299_s6 = scalar_lea.sflag [#allocation3], %s1840_s0 }
  0xbb   : > { %s1844_s16 = scalar_lea.vmem [#allocation6], %s1022_s17 }
  0xbc   : > { %1426 = dma.done.wait (%p2020_p12), %s299_s6, 128  }
  0xbd   : > { %1428 = vsyncadd (%p2020_p12), %s299_s6, 4294967168  ;;  %s307_s1 = sand.u32 1, %s1649_s30   ;;  %s311_s12 = scalar_lea.vmem [#allocation7], %s1022_s17 }
  0xbe   : > { %s308_s10 = scalar_lea.sflag [#allocation8], %s307_s1 }
  0xbf   : > { %1430 = dma.done.wait (%p2020_p12), %s308_s10, 128  }
  0xc0   : > { %1432 = vsyncadd (%p2020_p12), %s308_s10, 4294967168  ;;  %s318_s2 = sand.u32 1, %s1451_s19   ;;  %p2021_p1 = scmp.ne.s32.totalorder %s1994_s13, 0 }
  0xc1   : > { %s1024_s21 = sshll.u32 %s318_s2, 3 }
  0xc2   : > { %s320_s7 = scalar_lea.vmem [#allocation9], %s1024_s21 }
  0xc3   : > { %1434 = dma.done.wait (%p2021_p1), %s308_s10, 128  }
  0xc4   : > { %1436 = vsyncadd (%p2021_p1), %s308_s10, 4294967168  ;;  %s326_s8 = scalar_lea.sflag [#allocation11], %s318_s2  ;;  %s329_s30 = scalar_lea.vmem [#allocation10], %s1024_s21 }
  0xc5   : > { %1438 = dma.done.wait (%p2021_p1), %s326_s8, 128  }
  0xc6   : > { %1440 = vsyncadd (%p2021_p1), %s326_s8, 4294967168 }
  0xc7   : > { %334 = sfence }
  0xc8   : > { %s1865_s14 = scalar_lea.vmem [#allocation12], %s1840_s0  ;;  %p1026_p11 = scmp.ne.s32.totalorder %s1471_s24, 0 }
  0xc9   : > { %v1494_v0 = vmov (!%p1026_p11), 0.0  }
  0xca   : > { %374 = sbr.rel (%p1026_p11) target bundleno = 209 (0xd1), region = 64  ;;  %375 = vst [vmem:[%s1865_s14] sm:$0x1] (!%p1026_p11), %v1494_v0 }
  0xd1 PF: > { %v378_v1 = vld [vmem:[%s320_s7] sm:$0xff]  ;;  %vm381_vm0 = vcmask 261120   ;;  %v379_v2 = vld [vmem:[%s329_s30] sm:$0xff]  ;;  %v1495_v3 = vmov 0.0   ;;  %vm1496_vm1 = vmmov 0   ;;  %v1497_v11 = vmov 1.0  }
  0xd2   : > { %1051 = vmatprep.subr.mxu0 %v1495_v3  ;;  %1056 = vmatprep.subr.mxu1 %v1495_v3  ;;  %v389_v4 = vmul.f32 %v378_v1, %v378_v1  ;;  %v466_v5 = vmul.f32 %v379_v2, %v379_v2  ;;  %v376_v6 = vld [vmem:[%s1844_s16] sm:$0xff]  ;;  %v377_v7 = vld [vmem:[%s311_s12] sm:$0xff]  ;;  %v540_v13 = vlaneseq  ;;  %s1037_s24 = sld [smem:[#allocation2 + $0x4]]  ;;  %vm824_vm2 = vcmask 64512   ;;  %s2022_s13 = sld [smem:[#allocation21_spill]] }
  0xd3   : > { %1053 = vmatprep.mubr.msk.f32.mxu0 %vm1496_vm1, %v1495_v3  ;;  %1058 = vmatprep.mubr.msk.f32.mxu1 %vm1496_vm1, %v1495_v3  ;;  %v380_v8 = vmul.f32 %v376_v6, %v376_v6  ;;  %v385_v9 = vmul.f32 %v377_v7, %v377_v7  ;;  %s1038_s5 = sshll.u32 %s1475_s25, 4  ;;  %s852_s3 = sshll.u32 %s1865_s14, 4  ;;  %s1895_s3 = int_to_ptr.vmem [resolvable:$true] %s852_s3 }
  0xd4   : > { %1052 = vmatpush3.xpose.msk.msra.mxu0 %vm381_vm0, %v389_v4  ;;  %1057 = vmatpush3.xpose.msk.msra.mxu1 %vm381_vm0, %v466_v5  ;;  %v541_v14 = vshrl.u32 %v540_v13, 7  ;;  %s2023_s17 = sld [smem:[#allocation28_spill]]  ;;  %s840_s16 = scalar_lea.sflag [#allocation4], %s1840_s0 }
  0xd5   : > { %1061 = vmatprep.subr.mxu0 %v1495_v3  ;;  %1066 = vmatprep.subr.mxu1 %v1495_v3  ;;  %v382_v10 = vsel %vm381_vm0, %v380_v8, 0.0  ;;  %v386_v12 = vsel %vm381_vm0, %v385_v9, 0.0  ;;  %s1349_s1 = scalar_lea.vmem %s1895_s3, 16  ;;  %s1498_s25 = smov [#allocation12]  }
  0xd6   : > { %383 = vadd.xlane.f32.xlu0 %v382_v10  ;;  %v542_v16 = vsub.s32 0, %v541_v14  ;;  %p1350_p7 = scmp.ne.s32.totalorder %s1895_s3, %s1349_s1  ;;  %s1353_s10 = sshll.u32 %s1498_s25, 4  ;;  %s1354_s10 = int_to_ptr.vmem [resolvable:$false] %s1353_s10 }
  0xd7   : > { %1054 = vmatmul.mubr.msk.f32.vlgmr.msra.gmra.mrb[0].mxu0 %vm381_vm0, %v1497_v11  ;;  %1059 = vmatmul.mubr.msk.f32.vlgmr.msra.gmra.mrb[0].mxu1 %vm381_vm0, %v1497_v11  ;;  %s1355_s12 = scalar_lea.vmem %s1354_s10, 32  ;;  %p1356_p8 = scmp.lt.s32.totalorder %s1895_s3, %s1354_s10 }
  0xd8   : > { %1062 = vmatpush3.xpose.msk.msra.mxu0 %vm381_vm0, %v378_v1  ;;  %1067 = vmatpush3.xpose.msk.msra.mxu1 %vm381_vm0, %v379_v2  ;;  %v783_v34 = vstv %s1037_s24  ;;  %p2024_p0 = scmp.ne.s32.totalorder %s2022_s13, 0  ;;  %p1357_p10 = scmp.lt.s32.totalorder %s1355_s12, %s1349_s1 }
  0xd9   : > { %1063 = vmatprep.mubr.msk.f32.mxu0 %vm1496_vm1, %v1495_v3  ;;  %1068 = vmatprep.mubr.msk.f32.mxu1 %vm1496_vm1, %v1495_v3 }
  0xda   : > { %1071 = vmatprep.subr.mxu0 %v1495_v3  ;;  %387 = vadd.xlane.f32.xlu0 %v386_v12  ;;  %s1893_s6 = scalar_lea.hbm %s2023_s17, %s1038_s5  ;;  %p1351_p5 = pnand %p1350_p7, %p2024_p0 }
  0xdb   : > { %1064 = vmatmul.mubr.msk.f32.vlgmr.msra.gmra.mrb[2].mxu0 %vm381_vm0, %v376_v6  ;;  %1069 = vmatmul.mubr.msk.f32.vlgmr.msra.gmra.mrb[2].mxu1 %vm381_vm0, %v377_v7  ;;  %p1358_p2 = por %p1357_p10, %p1356_p8 }
  0xdc   : > { %1072 = vmatpush3.xpose.msk.msra.mxu0 %vm381_vm0, %v379_v2  ;;  %1073 = vmatprep.mubr.msk.f32.mxu0 %vm1496_vm1, %v1495_v3  ;;  %p1352_p6 = pneg %p1351_p5 }
  0xde   : > { %p1359_p9 = pnand %p1358_p2, %p1352_p6 }
  0xdf   : > { %1074 = vmatmul.mubr.msk.f32.vlgmr.msra.gmra.mrb[4].mxu0 %vm381_vm0, %v376_v6 }
 0x163   : > { %v384_v15 = vpop.xlane.xlu0 %383 }
 0x167   : > { %v388_v17 = vpop.xlane.xlu0 %387 }
 0x1aa   : > { %v462_v18 = vpop.f32.mrb[0].mxu0  ;;  %v536_v19 = vpop.f32.mrb[0].mxu1 }
 0x1ab   : > { %v543_v20 = vrot.slane %v462_v18, %v542_v16  ;;  %v1055_v21 = vpop.f32.mrb[1].mxu0  ;;  %v627_v22 = vrot.slane %v536_v19, %v542_v16  ;;  %v1060_v23 = vpop.f32.mrb[1].mxu1 }
 0x1ad   : > { %v628_v24 = vadd.f32 %v627_v22, %v388_v17  ;;  %v544_v27 = vadd.f32 %v543_v20, %v384_v15  ;;  %v708_v36 = vadd.f32 %v627_v22, %v384_v15 }
 0x1ae   : > { %v617_v25 = vpop.f32.mrb[2].mxu0  ;;  %v701_v26 = vpop.f32.mrb[2].mxu1 }
 0x1af   : > { %v621_v28 = vmul.f32 2.0, %v617_v25  ;;  %v705_v29 = vmul.f32 2.0, %v701_v26  ;;  %v1065_v30 = vpop.f32.mrb[3].mxu0  ;;  %v1070_v31 = vpop.f32.mrb[3].mxu1 }
 0x1b1   : > { %v622_v32 = vsub.f32 %v544_v27, %v621_v28  ;;  %v706_v33 = vsub.f32 %v628_v24, %v705_v29  ;;  %v835_v27 = vld [vmem:[%s1865_s14] sm:$0x1] }
 0x1b2   : > { %v775_v35 = vpop.f32.mrb[4].mxu0 }
 0x1b3   : > { %v623_v37 = vmax.f32 %v622_v32, 0.0  ;;  %v707_v38 = vmax.f32 %v706_v33, 0.0  ;;  %v779_v39 = vmul.f32 2.0, %v775_v35  ;;  %v1075_v40 = vpop.f32.mrb[5].mxu0 }
 0x1b5   : > { %v784_v41 = vmul.f32 %v783_v34, %v623_v37  ;;  %v787_v42 = vmul.f32 %v783_v34, %v707_v38  ;;  %v780_v43 = vsub.f32 %v708_v36, %v779_v39 }
 0x1b7   : > { %v785_v44 = vmul.f32 1.442695, %v784_v41  ;;  %v788_v45 = vmul.f32 1.442695, %v787_v42  ;;  %v781_v46 = vmax.f32 %v780_v43, 0.0 }
 0x1b9   : > { %1210 = vpow2.f32 %v785_v44  ;;  %v790_v47 = vmul.f32 %v783_v34, %v781_v46 }
 0x1ba   : > { %1212 = vpow2.f32 %v788_v45 }
 0x1bb   : > { %v791_v48 = vmul.f32 1.442695, %v790_v47 }
 0x1bd   : > { %1214 = vpow2.f32 %v791_v48 }
 0x1c3   : > { %v1211_v49 = vpop.eup %1210 }
 0x1c4   : > { %v1213_v50 = vpop.eup %1212  ;;  %v796_v55 = vmul.f32 %v1211_v49, %v1211_v49 }
 0x1c5   : > { %v793_v51 = vadd.f32 %v1213_v50, %v1211_v49  ;;  %v797_v57 = vmul.f32 %v1213_v50, %v1213_v50 }
 0x1c6   : > { %v803_v62 = vmul.f32 %v796_v55, %v796_v55 }
 0x1c7   : > { %v1215_v52 = vpop.eup %1214  ;;  %v804_v0 = vmul.f32 %v797_v57, %v797_v57 }
 0x1c8   : > { %v794_v53 = vmul.f32 2.0, %v1215_v52  ;;  %v798_v56 = vmul.f32 %v1215_v52, %v1215_v52  ;;  %v810_v5 = vmul.f32 %v803_v62, %v803_v62 }
 0x1c9   : > { %v811_v7 = vmul.f32 %v804_v0, %v804_v0 }
 0x1ca   : > { %v795_v54 = vsub.f32 %v793_v51, %v794_v53  ;;  %v801_v60 = vmul.f32 2.0, %v798_v56  ;;  %v805_v63 = vmul.f32 %v798_v56, %v798_v56  ;;  %v817_v12 = vmul.f32 %v810_v5, %v810_v5 }
 0x1cb   : > { %v818_v14 = vmul.f32 %v811_v7, %v811_v7 }
 0x1cc   : > { %v799_v58 = vadd.f32 %v796_v55, %v795_v54  ;;  %v808_v3 = vmul.f32 2.0, %v805_v63  ;;  %v812_v6 = vmul.f32 %v805_v63, %v805_v63 }
 0x1ce   : > { %v800_v59 = vadd.f32 %v799_v58, %v797_v57  ;;  %v815_v10 = vmul.f32 2.0, %v812_v6  ;;  %v819_v13 = vmul.f32 %v812_v6, %v812_v6 }
 0x1d0   : > { %v802_v61 = vsub.f32 %v800_v59, %v801_v60  ;;  %v822_v17 = vmul.f32 2.0, %v819_v13 }
 0x1d2   : > { %v806_v1 = vadd.f32 %v803_v62, %v802_v61 }
 0x1d4   : > { %v807_v2 = vadd.f32 %v806_v1, %v804_v0 }
 0x1d6   : > { %v809_v4 = vsub.f32 %v807_v2, %v808_v3 }
 0x1d8   : > { %v813_v8 = vadd.f32 %v810_v5, %v809_v4 }
 0x1da   : > { %v814_v9 = vadd.f32 %v813_v8, %v811_v7 }
 0x1dc   : > { %v816_v11 = vsub.f32 %v814_v9, %v815_v10 }
 0x1de   : > { %v820_v15 = vadd.f32 %v817_v12, %v816_v11 }
 0x1e0   : > { %v821_v16 = vadd.f32 %v820_v15, %v818_v14 }
 0x1e2   : > { %v823_v18 = vsub.f32 %v821_v16, %v822_v17 }
 0x1e4   : > { %v825_v19 = vsel %vm824_vm2, %v823_v18, 0.0 }
 0x1e5   : > { %826 = vadd.xlane.f32.xlu1 %v825_v19 }
 0x272   : > { %v827_v20 = vpop.xlane.xlu1 %826 }
 0x273   : > { %v828_v21 = vrot.slane %v827_v20, 4 }
 0x275   : > { %v829_v22 = vadd.f32 %v828_v21, %v827_v20 }
 0x277   : > { %v830_v23 = vrot.slane %v829_v22, 2 }
 0x279   : > { %v831_v24 = vadd.f32 %v830_v23, %v829_v22 }
 0x27b   : > { %v832_v25 = vrot.slane %v831_v24, 1 }
 0x27d   : > { %v833_v26 = vadd.f32 %v832_v25, %v831_v24 }
 0x27f   : > { %1076 = vpush %v833_v26 }
 0x2b0   : > { %s1077_s15 = spop %1076 }
 0x2b1   : > { %v836_v28 = vstv %s1077_s15 }
 0x2b2   : > { %v837_v29 = vadd.f32 %v836_v28, %v835_v27 }
 0x2b4   : > { %838 = vst [vmem:[%s1865_s14] sm:$0x1] %v837_v29 }
 0x2b5   : > { %1362 = shalt.err (!%p1359_p9)
}
 0x2b6   : > { %s1363_s0 = scalar_lea.hbm %s1893_s6, 16  ;;  %s1367_s7 = scalar_lea.hbm %s2023_s17, 32 }
 0x2b7   : > { %p1364_p4 = scmp.ne.s32.totalorder %s1893_s6, %s1363_s0  ;;  %p1368_p12 = scmp.lt.u32.totalorder %s1893_s6, %s2023_s17 }
 0x2b8   : > { %p1369_p1 = scmp.lt.u32.totalorder %s1367_s7, %s1363_s0  ;;  %p1371_p7 = scmp.lt.u32.totalorder %s1363_s0, %s1893_s6 }
 0x2b9   : > { %p1365_p3 = pnand %p1364_p4, %p2024_p0 }
 0x2ba   : > { %p1370_p11 = por %p1369_p1, %p1368_p12 }
 0x2bb   : > { %p1366_p13 = pneg %p1365_p3 }
 0x2bc   : > { %p1372_p5 = por %p1371_p7, %p1370_p11 }
 0x2be   : > { %p1373_p6 = pnand %p1372_p5, %p1366_p13 }
 0x2c0   : > { %1376 = shalt.err (!%p1373_p6)
}
 0x2c1   : > { %1090 = dma.vmem_to_hbm [thread:$0]  (%p2024_p0), %s1895_s3, 16, %s1893_s6, %s840_s16  }
 0x2c2 PF: > { %s2025_s14 = sld [smem:[#allocation20_spill]]  ;;  %s2026_s24 = sld [smem:[#allocation19_spill]] }
 0x2c3   : > { %s2027_s5 = sld [smem:[#allocation22_spill]] }
 0x2c8   : > { %p1116_p8 = scmp.ge.s32.totalorder %s2025_s14, 2  ;;  %s864_s15 = sand.u32 1, %s2026_s24  }
 0x2c9   : > { %p2028_p10 = scmp.ne.s32.totalorder %s2027_s5, 0  ;;  %s865_s11 = scalar_lea.sflag [#allocation4], %s864_s15 }
 0x2cb   : > { %p1110_p2 = pnand %p1116_p8, %p2028_p10 }
 0x2cd   : > { %1442 = dma.done.wait (!%p1110_p2), %s865_s11, 16  }
 0x2ce   : > { %1444 = vsyncadd (!%p1110_p2), %s865_s11, 4294967280  ;;  %s28_s9 = sadd.s32 1, %s2025_s14   ;;  %s2029_s13 = smov %s1802_s18 }
 0x2cf   : > { %p25_p9 = scmp.ge.s32.totalorder %s28_s9, 6   ;;  %s2030_s3 = sld [smem:[#allocation23_spill]] }
 0x2d0   : > { %s2031_s18 = smov %s1451_s19  ;;  %s2032_s19 = smov %s1455_s20 }
 0x2d1   : > { %s2033_s20 = smov %s1761_s29  ;;  %s2034_s21 = smov %s1463_s22 }
 0x2d2   : > { %s2035_s22 = smov %s1467_s23  ;;  %s2036_s23 = smov %s2029_s13 }
 0x2d3   : > { %s2037_s24 = smov %s1479_s26  ;;  %s2038_s25 = smov %s1483_s27 }
 0x2d4   : > { %s2039_s26 = smov %s2043_s28  ;;  %s2041_s28 = smov %s28_s9 }
 0x2d5   : > { %s2040_s27 = smov %s2030_s3  ;;  %27 = sbr.rel (!%p25_p9) target bundleno = 20 (0x14), region = 131 }
 0x2dc   :  { %869 = vsyncpa [#allocation3], 1 }
 0x2dd   :  { %871 = vsyncpa [#allocation3 + $0x1], 1 }
 0x2de   :  { %872 = vsyncpa [#allocation8], 1 }
 0x2df   :  { %874 = vsyncpa [#allocation8 + $0x1], 1 }
 0x2e0   :  { %875 = vsyncpa [#allocation11], 1 }
 0x2e1   :  { %877 = vsyncpa [#allocation11 + $0x1], 1 }
 0x2e2   :  { %878 = vsyncpa [#allocation4], 1 }
 0x2e3   :  { %880 = vsyncpa [#allocation4 + $0x1], 1 }
 0x2e4   :  { %881 = vsyncpa [#allocation5], 1 }
 0x2e5   :  { %883 = vsyncpa [#allocation5 + $0x1], 1 }

</bundles_post_ra>
